<compile_context>
chip_gen: v7x
topology: tpu7x:2x2x1
jax: 0.10.0
libtpu: 0.0.40
codegen_flags: <defaults>
</compile_context>

<pallas_src>
import jax
import jax.numpy as jnp
from jax.experimental import pallas as pl
from jax.experimental.pallas import tpu as pltpu


def _round_up(n, m):
    return ((n + m - 1) // m) * m


def _make_mlp5_kernel(out_pads):
    """Build the fused kernel, closed over the static padded layer widths."""
    offs = []
    o = 0
    for p in out_pads:
        offs.append(o)
        o += p
    n_layers = len(out_pads)

    def kernel(x_ref, w1_ref, w2_ref, w3_ref, w4_ref, w5_ref, b_ref, o_ref):
        # x arrives un-padded (tm, d_in) f32; cast to bf16 in-kernel (no wrapper pass).
        h = x_ref[...].astype(jnp.bfloat16)
        w_refs = (w1_ref, w2_ref, w3_ref, w4_ref, w5_ref)
        for l, w_ref in enumerate(w_refs):
            # bf16 x bf16 -> f32 on the MXU.
            acc = jnp.dot(h, w_ref[...], preferred_element_type=jnp.float32)
            acc = acc + b_ref[:, offs[l]:offs[l] + out_pads[l]]     # f32 epilogue
            if l < n_layers - 1:
                acc = jnp.maximum(acc, 0.0)                         # ReLU on f32 acc
                h = acc.astype(jnp.bfloat16)                        # feed next dot
            else:
                o_ref[...] = acc.astype(o_ref.dtype)                # bf16 store

    return kernel


def make_five_layer_net(params, *, compute_dtype=jnp.bfloat16, tm=None):
    """One-time prep of weights/biases; returns a jitted forward: x -> logits.

    params: list of 5 (W, b) tuples, W in PyTorch (out, in) layout, b shape (out,).
    tm:     batch tile; None => single grid step over the whole (padded) batch.
    """
    dims_in = [W.shape[1] for (W, _) in params]
    dims_out = [W.shape[0] for (W, _) in params]
    assert dims_in[1:] == dims_out[:-1], "layer dims must chain"
    d_in = dims_in[0]
    d_out = dims_out[-1]
    n_layers = len(params)

    itm = jnp.dtype(compute_dtype).itemsize

    # Lane padding for every layer OUTPUT (128-lane dense stores / MXU-friendly N).
    # Layer-l input padding is the previous layer's padded output; layer 0 keeps the
    # real K = d_in (no x padding at all).
    out_pads = [_round_up(d, 128) for d in dims_out]
    in_pads = [d_in] + out_pads[:-1]
    d_out_pad = out_pads[-1]

    # ---- one-time weight/bias preparation (NOT in the per-call path) ----
    ws, bs = [], []
    for l, (W, b) in enumerate(params):
        Wt = jnp.zeros((in_pads[l], out_pads[l]), compute_dtype)
        Wt = Wt.at[:dims_in[l], :dims_out[l]].set(jnp.asarray(W).T.astype(compute_dtype))
        ws.append(Wt)
        bp = jnp.zeros((out_pads[l],), jnp.float32)
        bp = bp.at[:dims_out[l]].set(jnp.asarray(b).astype(jnp.float32))
        bs.append(bp)
    ws = tuple(jax.device_put(w) for w in ws)
    b_cat = jax.device_put(jnp.concatenate(bs).reshape(1, -1))     # (1, sum(out_pads)) f32

    kernel = _make_mlp5_kernel(out_pads)

    def _const_spec(arr):
        nd = arr.ndim
        return pl.BlockSpec(arr.shape, lambda i, _nd=nd: (0,) * _nd)

    def _forward(x, ws, b_cat):
        B = x.shape[0]
        x_itm = jnp.dtype(x.dtype).itemsize

        block_m = tm if tm is not None else _round_up(B, 8)
        B_pad = _round_up(B, block_m)
        if B_pad != B:
            x_p = jnp.zeros((B_pad, d_in), x.dtype).at[:B].set(x)
        else:
            x_p = x
        grid = (B_pad // block_m,)

        in_specs = [pl.BlockSpec((block_m, d_in), lambda i: (i, 0))]
        in_specs += [_const_spec(w) for w in ws]
        in_specs += [_const_spec(b_cat)]
        out_specs = pl.BlockSpec((block_m, d_out_pad), lambda i: (i, 0))

        # Advisory cost estimate: REAL (unpadded) work, not padded work.
        real_flops = 2 * B * sum(i * o for i, o in zip(dims_in, dims_out))
        real_bytes = (B * d_in * x_itm
                      + sum(i * o for i, o in zip(dims_in, dims_out)) * itm
                      + sum(dims_out) * 4
                      + B * d_out * itm)
        cost = pl.CostEstimate(flops=real_flops, transcendentals=0,
                               bytes_accessed=real_bytes)

        # Tight VMEM budget (double-buffered tiles + resident weights/bias + live
        # f32 intermediates), 2x headroom, clamped to the 32 MiB scoped default.
        vmem_est = (2 * block_m * d_in * x_itm
                    + 2 * block_m * d_out_pad * itm
                    + 2 * sum(w.size for w in ws) * itm
                    + 2 * b_cat.size * 4
                    + 6 * block_m * max(out_pads) * 4)
        vmem_limit = int(min(max(2 * vmem_est, 4 * 1024 * 1024), 32 * 1024 * 1024))

        out_p = pl.pallas_call(
            kernel,
            out_shape=jax.ShapeDtypeStruct((B_pad, d_out_pad), compute_dtype),
            grid_spec=pltpu.PrefetchScalarGridSpec(
                num_scalar_prefetch=0,
                grid=grid,
                in_specs=in_specs,
                out_specs=out_specs,
            ),
            compiler_params=pltpu.CompilerParams(
                dimension_semantics=("parallel",),
                vmem_limit_bytes=vmem_limit),
            cost_estimate=cost,
        )(x_p, *ws, b_cat)

        # Slice away batch / lane padding; return in the caller's dtype.
        return out_p[:B, :d_out].astype(x.dtype)

    _forward_jit = jax.jit(_forward)

    def apply(x):
        return _forward_jit(x, ws, b_cat)

    return apply


def init_linear(key, out_f, in_f):
    # Deterministic init (PyTorch-Linear-like uniform bound 1/sqrt(fan_in)).
    kw, kb = jax.random.split(key)
    bound = 1.0 / (in_f ** 0.5)
    W = jax.random.uniform(kw, (out_f, in_f), jnp.float32, -bound, bound)
    b = jax.random.uniform(kb, (out_f,), jnp.float32, -bound, bound)
    return W, b


def reference_forward(x, params):
    h = x
    for idx, (W, b) in enumerate(params):
        h = h @ W.T + b
        if idx < len(params) - 1:
            h = jnp.maximum(h, 0.0)
    return h


if __name__ == "__main__":
    key = jax.random.PRNGKey(0)
    k_x, k1, k2, k3, k4, k5 = jax.random.split(key, 6)

    # 5-layer MLP: 32 -> 64 -> 64 -> 32 -> 16 -> 10; batch 256 -> single grid step.
    B = 256
    dims = [32, 64, 64, 32, 16, 10]

    x = jax.random.normal(k_x, (B, dims[0]), jnp.float32)
    params = [
        init_linear(k1, dims[1], dims[0]),
        init_linear(k2, dims[2], dims[1]),
        init_linear(k3, dims[3], dims[2]),
        init_linear(k4, dims[4], dims[3]),
        init_linear(k5, dims[5], dims[4]),
    ]

    # One-time prep (weights padded/cast/transposed once), jitted forward.
    net = make_five_layer_net(params)

    out = net(x)
    out = jax.block_until_ready(out)

    ref = reference_forward(x, params)
    assert out.shape == (B, dims[-1])
    # bf16 operands / f32 accumulation / bf16 output vs pure-f32 reference.
    max_err = float(jnp.max(jnp.abs(out - ref)))
    assert jnp.allclose(out, ref, atol=5e-2, rtol=5e-2), f"max abs err {max_err}"

    print("KERNEL_OK")
</pallas_src>

<mosaic_0001>
module attributes {stable_mosaic.version = 11 : i64} {
  func.func @kernel(%arg0: i32, %arg1: memref<256x32xf32, #tpu.memory_space<vmem>>, %arg2: memref<32x128xbf16, #tpu.memory_space<vmem>>, %arg3: memref<128x128xbf16, #tpu.memory_space<vmem>>, %arg4: memref<128x128xbf16, #tpu.memory_space<vmem>>, %arg5: memref<128x128xbf16, #tpu.memory_space<vmem>>, %arg6: memref<128x128xbf16, #tpu.memory_space<vmem>>, %arg7: memref<1x640xf32, #tpu.memory_space<vmem>>, %arg8: memref<256x128xbf16, #tpu.memory_space<vmem>>) attributes {dimension_semantics = [#tpu.dimension_semantics<parallel>], iteration_bounds = array<i64: 1>, scalar_prefetch = 0 : i64, scratch_operands = 0 : i64, tpu.core_type = #tpu.core_type<tc>, window_params = [{transform_indices = @transform_0, window_bounds = array<i64: 256, 32>}, {pipeline_mode = #tpu.pipeline_mode<synchronous>, transform_indices = @transform_1, window_bounds = array<i64: 32, 128>}, {pipeline_mode = #tpu.pipeline_mode<synchronous>, transform_indices = @transform_2, window_bounds = array<i64: 128, 128>}, {pipeline_mode = #tpu.pipeline_mode<synchronous>, transform_indices = @transform_3, window_bounds = array<i64: 128, 128>}, {pipeline_mode = #tpu.pipeline_mode<synchronous>, transform_indices = @transform_4, window_bounds = array<i64: 128, 128>}, {pipeline_mode = #tpu.pipeline_mode<synchronous>, transform_indices = @transform_5, window_bounds = array<i64: 128, 128>}, {pipeline_mode = #tpu.pipeline_mode<synchronous>, transform_indices = @transform_6, window_bounds = array<i64: 1, 640>}, {transform_indices = @transform_7, window_bounds = array<i64: 256, 128>}]} {
    %c0 = arith.constant 0 : index
    %c0_0 = arith.constant 0 : index
    %0 = vector.load %arg1[%c0, %c0_0] : memref<256x32xf32, #tpu.memory_space<vmem>>, vector<256x32xf32>
    %1 = arith.truncf %0 : vector<256x32xf32> to vector<256x32xbf16>
    %c0_1 = arith.constant 0 : index
    %c0_2 = arith.constant 0 : index
    %2 = vector.load %arg2[%c0_1, %c0_2] : memref<32x128xbf16, #tpu.memory_space<vmem>>, vector<32x128xbf16>
    %cst = arith.constant dense<0.000000e+00> : vector<256x128xf32>
    %3 = tpu.matmul %1, %2, %cst {dimension_numbers = #tpu.dot_dimension_numbers<[1], [0], [0], [1], [0, 0, 1, 1], [], []>} : vector<256x32xbf16>, vector<32x128xbf16>, vector<256x128xf32> -> vector<256x128xf32>
    %c0_3 = arith.constant 0 : index
    %c0_4 = arith.constant 0 : index
    %4 = vector.load %arg7[%c0_3, %c0_4] : memref<1x640xf32, #tpu.memory_space<vmem>>, vector<1x128xf32>
    %5 = vector.broadcast %4 : vector<1x128xf32> to vector<256x128xf32>
    %6 = arith.addf %3, %5 : vector<256x128xf32>
    %cst_5 = arith.constant 0.000000e+00 : f32
    %7 = vector.broadcast %cst_5 : f32 to vector<256x128xf32>
    %8 = arith.maximumf %6, %7 : vector<256x128xf32>
    %9 = arith.truncf %8 : vector<256x128xf32> to vector<256x128xbf16>
    %c0_6 = arith.constant 0 : index
    %c0_7 = arith.constant 0 : index
    %10 = vector.load %arg3[%c0_6, %c0_7] : memref<128x128xbf16, #tpu.memory_space<vmem>>, vector<128x128xbf16>
    %cst_8 = arith.constant dense<0.000000e+00> : vector<256x128xf32>
    %11 = tpu.matmul %9, %10, %cst_8 {dimension_numbers = #tpu.dot_dimension_numbers<[1], [0], [0], [1], [0, 0, 1, 1], [], []>} : vector<256x128xbf16>, vector<128x128xbf16>, vector<256x128xf32> -> vector<256x128xf32>
    %c0_9 = arith.constant 0 : index
    %c128 = arith.constant 128 : index
    %12 = vector.load %arg7[%c0_9, %c128] : memref<1x640xf32, #tpu.memory_space<vmem>>, vector<1x128xf32>
    %13 = vector.broadcast %12 : vector<1x128xf32> to vector<256x128xf32>
    %14 = arith.addf %11, %13 : vector<256x128xf32>
    %cst_10 = arith.constant 0.000000e+00 : f32
    %15 = vector.broadcast %cst_10 : f32 to vector<256x128xf32>
    %16 = arith.maximumf %14, %15 : vector<256x128xf32>
    %17 = arith.truncf %16 : vector<256x128xf32> to vector<256x128xbf16>
    %c0_11 = arith.constant 0 : index
    %c0_12 = arith.constant 0 : index
    %18 = vector.load %arg4[%c0_11, %c0_12] : memref<128x128xbf16, #tpu.memory_space<vmem>>, vector<128x128xbf16>
    %cst_13 = arith.constant dense<0.000000e+00> : vector<256x128xf32>
    %19 = tpu.matmul %17, %18, %cst_13 {dimension_numbers = #tpu.dot_dimension_numbers<[1], [0], [0], [1], [0, 0, 1, 1], [], []>} : vector<256x128xbf16>, vector<128x128xbf16>, vector<256x128xf32> -> vector<256x128xf32>
    %c0_14 = arith.constant 0 : index
    %c256 = arith.constant 256 : index
    %20 = vector.load %arg7[%c0_14, %c256] : memref<1x640xf32, #tpu.memory_space<vmem>>, vector<1x128xf32>
    %21 = vector.broadcast %20 : vector<1x128xf32> to vector<256x128xf32>
    %22 = arith.addf %19, %21 : vector<256x128xf32>
    %cst_15 = arith.constant 0.000000e+00 : f32
    %23 = vector.broadcast %cst_15 : f32 to vector<256x128xf32>
    %24 = arith.maximumf %22, %23 : vector<256x128xf32>
    %25 = arith.truncf %24 : vector<256x128xf32> to vector<256x128xbf16>
    %c0_16 = arith.constant 0 : index
    %c0_17 = arith.constant 0 : index
    %26 = vector.load %arg5[%c0_16, %c0_17] : memref<128x128xbf16, #tpu.memory_space<vmem>>, vector<128x128xbf16>
    %cst_18 = arith.constant dense<0.000000e+00> : vector<256x128xf32>
    %27 = tpu.matmul %25, %26, %cst_18 {dimension_numbers = #tpu.dot_dimension_numbers<[1], [0], [0], [1], [0, 0, 1, 1], [], []>} : vector<256x128xbf16>, vector<128x128xbf16>, vector<256x128xf32> -> vector<256x128xf32>
    %c0_19 = arith.constant 0 : index
    %c384 = arith.constant 384 : index
    %28 = vector.load %arg7[%c0_19, %c384] : memref<1x640xf32, #tpu.memory_space<vmem>>, vector<1x128xf32>
    %29 = vector.broadcast %28 : vector<1x128xf32> to vector<256x128xf32>
    %30 = arith.addf %27, %29 : vector<256x128xf32>
    %cst_20 = arith.constant 0.000000e+00 : f32
    %31 = vector.broadcast %cst_20 : f32 to vector<256x128xf32>
    %32 = arith.maximumf %30, %31 : vector<256x128xf32>
    %33 = arith.truncf %32 : vector<256x128xf32> to vector<256x128xbf16>
    %c0_21 = arith.constant 0 : index
    %c0_22 = arith.constant 0 : index
    %34 = vector.load %arg6[%c0_21, %c0_22] : memref<128x128xbf16, #tpu.memory_space<vmem>>, vector<128x128xbf16>
    %cst_23 = arith.constant dense<0.000000e+00> : vector<256x128xf32>
    %35 = tpu.matmul %33, %34, %cst_23 {dimension_numbers = #tpu.dot_dimension_numbers<[1], [0], [0], [1], [0, 0, 1, 1], [], []>} : vector<256x128xbf16>, vector<128x128xbf16>, vector<256x128xf32> -> vector<256x128xf32>
    %c0_24 = arith.constant 0 : index
    %c512 = arith.constant 512 : index
    %36 = vector.load %arg7[%c0_24, %c512] : memref<1x640xf32, #tpu.memory_space<vmem>>, vector<1x128xf32>
    %37 = vector.broadcast %36 : vector<1x128xf32> to vector<256x128xf32>
    %38 = arith.addf %35, %37 : vector<256x128xf32>
    %39 = arith.truncf %38 : vector<256x128xf32> to vector<256x128xbf16>
    %c0_25 = arith.constant 0 : index
    %c0_26 = arith.constant 0 : index
    %40 = vector.load %arg8[%c0_25, %c0_26] : memref<256x128xbf16, #tpu.memory_space<vmem>>, vector<256x128xbf16>
    tpu.vector_store %arg8[%c0_25, %c0_26], %39 {strides = array<i32>} : memref<256x128xbf16, #tpu.memory_space<vmem>>, vector<256x128xbf16>,
    return
  }
  func.func @transform_0(%arg0: i32) -> (i32, i32) {
    %c0_i32 = arith.constant 0 : i32
    %c0_i32_0 = arith.constant 0 : i32
    return %arg0, %c0_i32 : i32, i32
  }
  func.func @transform_1(%arg0: i32) -> (i32, i32) {
    %c0_i32 = arith.constant 0 : i32
    %c0_i32_0 = arith.constant 0 : i32
    %c0_i32_1 = arith.constant 0 : i32
    return %c0_i32, %c0_i32_0 : i32, i32
  }
  func.func @transform_2(%arg0: i32) -> (i32, i32) {
    %c0_i32 = arith.constant 0 : i32
    %c0_i32_0 = arith.constant 0 : i32
    %c0_i32_1 = arith.constant 0 : i32
    return %c0_i32, %c0_i32_0 : i32, i32
  }
  func.func @transform_3(%arg0: i32) -> (i32, i32) {
    %c0_i32 = arith.constant 0 : i32
    %c0_i32_0 = arith.constant 0 : i32
    %c0_i32_1 = arith.constant 0 : i32
    return %c0_i32, %c0_i32_0 : i32, i32
  }
  func.func @transform_4(%arg0: i32) -> (i32, i32) {
    %c0_i32 = arith.constant 0 : i32
    %c0_i32_0 = arith.constant 0 : i32
    %c0_i32_1 = arith.constant 0 : i32
    return %c0_i32, %c0_i32_0 : i32, i32
  }
  func.func @transform_5(%arg0: i32) -> (i32, i32) {
    %c0_i32 = arith.constant 0 : i32
    %c0_i32_0 = arith.constant 0 : i32
    %c0_i32_1 = arith.constant 0 : i32
    return %c0_i32, %c0_i32_0 : i32, i32
  }
  func.func @transform_6(%arg0: i32) -> (i32, i32) {
    %c0_i32 = arith.constant 0 : i32
    %c0_i32_0 = arith.constant 0 : i32
    %c0_i32_1 = arith.constant 0 : i32
    return %c0_i32, %c0_i32_0 : i32, i32
  }
  func.func @transform_7(%arg0: i32) -> (i32, i32) {
    %c0_i32 = arith.constant 0 : i32
    %c0_i32_0 = arith.constant 0 : i32
    return %arg0, %c0_i32 : i32, i32
  }
}

</mosaic_0001>

<bundles_post_ra>
// kernel: _forward.1
= control target key start
LH: loop header
LB: loop body
LE: loop exit
PB: predicated region body
PF: predicated region fallthrough
CT: control target
= control target key end

     0   :  { %vm98_vm0 = vcmask 261120   ;;  %s2682_s1 = inlined_call_operand.vmem [shape: bf16[32,128], index: 1, kind: input, shape index: {}]   ;;  %s2683_s0 = inlined_call_operand.vmem [shape: f32[256,32], index: 0, kind: input, shape index: {}]   ;;  %s2684_s2 = inlined_call_operand.vmem [shape: bf16[128,128], index: 2, kind: input, shape index: {}]   ;;  %s2685_s3 = inlined_call_operand.vmem [shape: bf16[128,128], index: 3, kind: input, shape index: {}]   ;;  %s2686_s6 = inlined_call_operand.vmem [shape: f32[1,640], index: 6, kind: input, shape index: {}]   ;;  %s2687_s4 = inlined_call_operand.vmem [shape: bf16[128,128], index: 4, kind: input, shape index: {}]   ;;  %s2688_s5 = inlined_call_operand.vmem [shape: bf16[128,128], index: 5, kind: input, shape index: {}]   ;;  %s2689_s7 = inlined_call_operand.vmem [shape: bf16[256,128], index: 7, kind: output, shape index: {}]  }
   0x1   :  { %v2152_v0 = vld [vmem:[%s2682_s1] sm:$0xff]   ;;  %v2153_v1 = vld [vmem:[%s2682_s1 + $0x8] sm:$0xff]   ;;  %v29_v5 = vld [vmem:[%s2683_s0 + $0x10] sm:$0xff] }
   0x2   :  { %1920 = vmatprep.subr.bf16.mxu0 %v2152_v0  ;;  %v27_v2 = vld [vmem:[%s2683_s0] sm:$0xff]  ;;  %v28_v3 = vld [vmem:[%s2683_s0 + $0x8] sm:$0xff]  ;;  %2148 = vmatprep.subr.bf16.mxu1 %v2152_v0  ;;  %v30_v6 = vld [vmem:[%s2683_s0 + $0x18] sm:$0xff] }
   0x3   :  { %1921 = vmatpush3.bf16.msra.mxu0 %v2152_v0  ;;  %v59_v4 = vpack.c.bf16 %v28_v3, %v27_v2  ;;  %2150 = vmatpush3.bf16.msra.mxu1 %v2152_v0  ;;  %v31_v7 = vld [vmem:[%s2683_s0 + $0x20] sm:$0xff]  ;;  %v32_v8 = vld [vmem:[%s2683_s0 + $0x28] sm:$0xff]  ;;  %v60_v9 = vpack.c.bf16 %v30_v6, %v29_v5  ;;  %v45_v14 = vld [vmem:[%s2683_s0 + $0x90] sm:$0xff] }
   0x4   :  { %1922 = vmatprep.subr.bf16.mxu0 %v2153_v1  ;;  %2149 = vmatprep.subr.bf16.mxu1 %v2153_v1  ;;  %v61_v10 = vpack.c.bf16 %v32_v8, %v31_v7  ;;  %v43_v11 = vld [vmem:[%s2683_s0 + $0x80] sm:$0xff]  ;;  %v44_v12 = vld [vmem:[%s2683_s0 + $0x88] sm:$0xff]  ;;  %v46_v15 = vld [vmem:[%s2683_s0 + $0x98] sm:$0xff] }
   0x5   :  { %1924 = vmatprep.mubr.msk.bf16.mxu0 %vm98_vm0, %v59_v4  ;;  %v67_v13 = vpack.c.bf16 %v44_v12, %v43_v11  ;;  %v47_v16 = vld [vmem:[%s2683_s0 + $0xa0] sm:$0xff]  ;;  %v68_v17 = vpack.c.bf16 %v46_v15, %v45_v14  ;;  %v48_v18 = vld [vmem:[%s2683_s0 + $0xa8] sm:$0xff]  ;;  %v33_v19 = vld [vmem:[%s2683_s0 + $0x30] sm:$0xff] }
   0x6   :  { %v34_v20 = vld [vmem:[%s2683_s0 + $0x38] sm:$0xff]  ;;  %v35_v21 = vld [vmem:[%s2683_s0 + $0x40] sm:$0xff]  ;;  %v69_v22 = vpack.c.bf16 %v48_v18, %v47_v16  ;;  %v36_v23 = vld [vmem:[%s2683_s0 + $0x48] sm:$0xff] }
   0x7   :  { %1923 = vmatpush3.bf16.msra.mxu0 %v2153_v1  ;;  %2151 = vmatpush3.bf16.msra.mxu1 %v2153_v1  ;;  %v49_v24 = vld [vmem:[%s2683_s0 + $0xb0] sm:$0xff]  ;;  %v50_v25 = vld [vmem:[%s2683_s0 + $0xb8] sm:$0xff]  ;;  %v51_v26 = vld [vmem:[%s2683_s0 + $0xc0] sm:$0xff]  ;;  %v62_v29 = vpack.c.bf16 %v34_v20, %v33_v19  ;;  %v63_v31 = vpack.c.bf16 %v36_v23, %v35_v21 }
   0x8   :  { %1940 = vmatprep.mubr.msk.bf16.mxu1 %vm98_vm0, %v67_v13  ;;  %v52_v27 = vld [vmem:[%s2683_s0 + $0xc8] sm:$0xff]  ;;  %v2154_v28 = vld [vmem:[%s2684_s2] sm:$0xff]   ;;  %v70_v32 = vpack.c.bf16 %v50_v25, %v49_v24  ;;  %v37_v34 = vld [vmem:[%s2683_s0 + $0x50] sm:$0xff] }
   0x9   :  { %v2155_v30 = vld [vmem:[%s2684_s2 + $0x8] sm:$0xff]   ;;  %1956 = vmatprep.subr.bf16.mxu1 %v2154_v28  ;;  %v71_v33 = vpack.c.bf16 %v52_v27, %v51_v26  ;;  %v38_v35 = vld [vmem:[%s2683_s0 + $0x58] sm:$0xff]  ;;  %v2156_v36 = vld [vmem:[%s2684_s2 + $0x10] sm:$0xff]  }
   0xa   :  { %1925 = vmatmul.mubr.msk.bf16.vlgmr.msra.gmra.mrb[0].mxu0 %vm98_vm0, %v60_v9  ;;  %1941 = vmatmul.mubr.msk.bf16.vlgmr.msra.gmra.mrb[0].mxu1 %vm98_vm0, %v68_v17  ;;  %v39_v37 = vld [vmem:[%s2683_s0 + $0x60] sm:$0xff]  ;;  %v40_v38 = vld [vmem:[%s2683_s0 + $0x68] sm:$0xff]  ;;  %v53_v39 = vld [vmem:[%s2683_s0 + $0xd0] sm:$0xff]  ;;  %v64_v44 = vpack.c.bf16 %v38_v35, %v37_v34 }
   0xb   :  { %1928 = vmatprep.mubr.msk.bf16.mxu0 %vm98_vm0, %v61_v10  ;;  %1944 = vmatprep.mubr.msk.bf16.mxu1 %vm98_vm0, %v69_v22  ;;  %v54_v40 = vld [vmem:[%s2683_s0 + $0xd8] sm:$0xff]  ;;  %v55_v41 = vld [vmem:[%s2683_s0 + $0xe0] sm:$0xff]  ;;  %v56_v42 = vld [vmem:[%s2683_s0 + $0xe8] sm:$0xff]  ;;  %v65_v45 = vpack.c.bf16 %v40_v38, %v39_v37 }
   0xc   :  { %1957 = vmatpush3.bf16.msra.mxu1 %v2154_v28  ;;  %v2157_v43 = vld [vmem:[%s2684_s2 + $0x18] sm:$0xff]   ;;  %v72_v46 = vpack.c.bf16 %v54_v40, %v53_v39  ;;  %v73_v47 = vpack.c.bf16 %v56_v42, %v55_v41  ;;  %v2158_v48 = vld [vmem:[%s2684_s2 + $0x20] sm:$0xff]   ;;  %v41_v49 = vld [vmem:[%s2683_s0 + $0x70] sm:$0xff] }
   0xd   :  { %1958 = vmatprep.subr.bf16.mxu1 %v2155_v30  ;;  %v42_v50 = vld [vmem:[%s2683_s0 + $0x78] sm:$0xff]  ;;  %v57_v51 = vld [vmem:[%s2683_s0 + $0xf0] sm:$0xff]  ;;  %v2159_v53 = vld [vmem:[%s2684_s2 + $0x28] sm:$0xff]  }
   0xe   :  { %v58_v52 = vld [vmem:[%s2683_s0 + $0xf8] sm:$0xff]  ;;  %v66_v54 = vpack.c.bf16 %v42_v50, %v41_v49  ;;  %v2160_v56 = vld [vmem:[%s2684_s2 + $0x30] sm:$0xff]   ;;  %v2162_v58 = vld [vmem:[%s2685_s3] sm:$0xff]  }
   0xf   :  { %v74_v55 = vpack.c.bf16 %v58_v52, %v57_v51  ;;  %v2161_v57 = vld [vmem:[%s2684_s2 + $0x38] sm:$0xff]   ;;  %v2163_v59 = vld [vmem:[%s2685_s3 + $0x8] sm:$0xff]   ;;  %2004 = vmatprep.subr.bf16.mxu0 %v2162_v58  ;;  %v2164_v60 = vld [vmem:[%s2685_s3 + $0x10] sm:$0xff]  }
  0x10   :  { %1959 = vmatpush3.bf16.msra.mxu1 %v2155_v30  ;;  %2005 = vmatpush3.bf16.msra.mxu0 %v2162_v58  ;;  %v2165_v61 = vld [vmem:[%s2685_s3 + $0x18] sm:$0xff]   ;;  %v2166_v62 = vld [vmem:[%s2685_s3 + $0x20] sm:$0xff]   ;;  %v2167_v63 = vld [vmem:[%s2685_s3 + $0x28] sm:$0xff]  }
  0x11   :  { %1960 = vmatprep.subr.bf16.mxu1 %v2156_v36  ;;  %2006 = vmatprep.subr.bf16.mxu0 %v2163_v59  ;;  %v2389_v0 = vld [vmem:[%s2686_s6] ss:$0 sm:$0xff] }
  0x12   :  { %1929 = vmatmul.mubr.msk.bf16.gmra.mrb[4].mxu0 %vm98_vm0, %v62_v29  ;;  %1945 = vmatmul.mubr.msk.bf16.gmra.mrb[4].mxu1 %vm98_vm0, %v70_v32 }
  0x13   :  { %1932 = vmatprep.mubr.msk.bf16.mxu0 %vm98_vm0, %v63_v31  ;;  %1948 = vmatprep.mubr.msk.bf16.mxu1 %vm98_vm0, %v71_v33 }
  0x14   :  { %1961 = vmatpush3.bf16.msra.mxu1 %v2156_v36  ;;  %2007 = vmatpush3.bf16.msra.mxu0 %v2163_v59 }
  0x15   :  { %1962 = vmatprep.subr.bf16.mxu1 %v2157_v43  ;;  %2008 = vmatprep.subr.bf16.mxu0 %v2164_v60 }
  0x18   :  { %1963 = vmatpush3.bf16.msra.mxu1 %v2157_v43  ;;  %2009 = vmatpush3.bf16.msra.mxu0 %v2164_v60 }
  0x19   :  { %1964 = vmatprep.subr.bf16.mxu1 %v2158_v48  ;;  %2010 = vmatprep.subr.bf16.mxu0 %v2165_v61 }
  0x1a   :  { %1933 = vmatmul.mubr.msk.bf16.gmra.mrb[8].mxu0 %vm98_vm0, %v64_v44  ;;  %1949 = vmatmul.mubr.msk.bf16.gmra.mrb[8].mxu1 %vm98_vm0, %v72_v46 }
  0x1b   :  { %1936 = vmatprep.mubr.msk.bf16.mxu0 %vm98_vm0, %v65_v45  ;;  %1952 = vmatprep.mubr.msk.bf16.mxu1 %vm98_vm0, %v73_v47 }
  0x1c   :  { %1965 = vmatpush3.bf16.msra.mxu1 %v2158_v48  ;;  %2011 = vmatpush3.bf16.msra.mxu0 %v2165_v61 }
  0x1d   :  { %1966 = vmatprep.subr.bf16.mxu1 %v2159_v53  ;;  %2012 = vmatprep.subr.bf16.mxu0 %v2166_v62 }
  0x20   :  { %1967 = vmatpush3.bf16.msra.mxu1 %v2159_v53  ;;  %2013 = vmatpush3.bf16.msra.mxu0 %v2166_v62 }
  0x21   :  { %1968 = vmatprep.subr.bf16.mxu1 %v2160_v56  ;;  %2014 = vmatprep.subr.bf16.mxu0 %v2167_v63 }
  0x22   :  { %1937 = vmatmul.mubr.msk.bf16.gmra.mrb[12].mxu0 %vm98_vm0, %v66_v54  ;;  %1953 = vmatmul.mubr.msk.bf16.gmra.mrb[12].mxu1 %vm98_vm0, %v74_v55 }
  0x24   :  { %1969 = vmatpush3.bf16.msra.mxu1 %v2160_v56  ;;  %2015 = vmatpush3.bf16.msra.mxu0 %v2167_v63 }
  0x25   :  { %1970 = vmatprep.subr.bf16.mxu1 %v2161_v57 }
  0x28   :  { %1971 = vmatpush3.bf16.msra.mxu1 %v2161_v57 }
  0xdd   :  { %v1926_v1 = vpop.f32.mrb[0].mxu0  ;;  %v1942_v4 = vpop.f32.mrb[0].mxu1 }
  0xde   :  { %v190_v2 = vadd.f32 %v1926_v1, %v2389_v0  ;;  %v181_v3 = vpop.f32.mrb[1].mxu0  ;;  %v254_v7 = vadd.f32 %v1942_v4, %v2389_v0  ;;  %v245_v8 = vpop.f32.mrb[1].mxu1 }
  0xdf   :  { %v182_v5 = vadd.f32 %v2389_v0, %v181_v3  ;;  %v1927_v6 = vpop.f32.mrb[2].mxu0  ;;  %v246_v11 = vadd.f32 %v2389_v0, %v245_v8  ;;  %v1943_v12 = vpop.f32.mrb[2].mxu1 }
  0xe0   :  { %v193_v9 = vadd.f32 %v1927_v6, %v2389_v0  ;;  %v184_v10 = vpop.f32.mrb[3].mxu0  ;;  %v326_v14 = vmax.f32 %v254_v7, 0.0  ;;  %v257_v15 = vadd.f32 %v1943_v12, %v2389_v0  ;;  %v248_v16 = vpop.f32.mrb[3].mxu1  ;;  %v310_v17 = vmax.f32 %v190_v2, 0.0 }
  0xe1   :  { %v185_v13 = vadd.f32 %v2389_v0, %v184_v10  ;;  %v324_v19 = vmax.f32 %v246_v11, 0.0  ;;  %v249_v20 = vadd.f32 %v2389_v0, %v248_v16  ;;  %v308_v21 = vmax.f32 %v182_v5, 0.0 }
  0xe2   :  { %v311_v18 = vmax.f32 %v193_v9, 0.0  ;;  %v327_v23 = vmax.f32 %v257_v15, 0.0 }
  0xe3   :  { %v309_v22 = vmax.f32 %v185_v13, 0.0  ;;  %v325_v25 = vmax.f32 %v249_v20, 0.0 }
  0xe4   :  { %v341_v24 = vpack.c.bf16 %v311_v18, %v310_v17  ;;  %v2399_v28 = vpack.c.bf16 %v327_v23, %v326_v14 }
  0xe5   :  { %v340_v26 = vpack.c.bf16 %v309_v22, %v308_v21  ;;  %v1930_v27 = vpop.f32.mrb[4].mxu0  ;;  %v2402_v31 = vpack.c.bf16 %v325_v25, %v324_v19  ;;  %v1946_v32 = vpop.f32.mrb[4].mxu1 }
  0xe6   :  { %v206_v29 = vadd.f32 %v1930_v27, %v2389_v0  ;;  %v197_v30 = vpop.f32.mrb[5].mxu0  ;;  %v270_v35 = vadd.f32 %v1946_v32, %v2389_v0  ;;  %v261_v36 = vpop.f32.mrb[5].mxu1 }
  0xe7   :  { %v198_v33 = vadd.f32 %v2389_v0, %v197_v30  ;;  %v1931_v34 = vpop.f32.mrb[6].mxu0  ;;  %1972 = vmatprep.mubr.bf16.mxu1 %v340_v26  ;;  %v262_v39 = vadd.f32 %v2389_v0, %v261_v36  ;;  %v1947_v40 = vpop.f32.mrb[6].mxu1 }
  0xe8   :  { %v209_v37 = vadd.f32 %v1931_v34, %v2389_v0  ;;  %v200_v38 = vpop.f32.mrb[7].mxu0  ;;  %1973 = vmatmul.mubr.bf16.vlgmr.msra.gmra.mrb[16].mxu1 %v341_v24  ;;  %v330_v42 = vmax.f32 %v270_v35, 0.0  ;;  %v273_v43 = vadd.f32 %v1947_v40, %v2389_v0  ;;  %v264_v44 = vpop.f32.mrb[7].mxu1  ;;  %v314_v45 = vmax.f32 %v206_v29, 0.0 }
  0xe9   :  { %v201_v41 = vadd.f32 %v2389_v0, %v200_v38  ;;  %v328_v47 = vmax.f32 %v262_v39, 0.0  ;;  %v265_v48 = vadd.f32 %v2389_v0, %v264_v44  ;;  %v312_v49 = vmax.f32 %v198_v33, 0.0 }
  0xea   :  { %v315_v46 = vmax.f32 %v209_v37, 0.0  ;;  %v331_v51 = vmax.f32 %v273_v43, 0.0 }
  0xeb   :  { %v313_v50 = vmax.f32 %v201_v41, 0.0  ;;  %v329_v53 = vmax.f32 %v265_v48, 0.0 }
  0xec   :  { %v343_v52 = vpack.c.bf16 %v315_v46, %v314_v45  ;;  %v2411_v56 = vpack.c.bf16 %v331_v51, %v330_v42 }
  0xed   :  { %v342_v54 = vpack.c.bf16 %v313_v50, %v312_v49  ;;  %v1934_v55 = vpop.f32.mrb[8].mxu0  ;;  %v350_v59 = vpack.c.bf16 %v329_v53, %v328_v47  ;;  %v1950_v60 = vpop.f32.mrb[8].mxu1  ;;  %v2172_v53 = vld [vmem:[%s2687_s4 + $0x10] sm:$0xff]  }
  0xee   :  { %v222_v57 = vadd.f32 %v1934_v55, %v2389_v0  ;;  %v213_v58 = vpop.f32.mrb[9].mxu0  ;;  %v286_v63 = vadd.f32 %v1950_v60, %v2389_v0  ;;  %v277_v1 = vpop.f32.mrb[9].mxu1  ;;  %v2174_v55 = vld [vmem:[%s2687_s4 + $0x20] sm:$0xff]  }
  0xef   :  { %v214_v61 = vadd.f32 %v2389_v0, %v213_v58  ;;  %v1935_v62 = vpop.f32.mrb[10].mxu0  ;;  %1976 = vmatprep.mubr.bf16.mxu1 %v342_v54  ;;  %v278_v4 = vadd.f32 %v2389_v0, %v277_v1  ;;  %v1951_v5 = vpop.f32.mrb[10].mxu1  ;;  %v2173_v54 = vld [vmem:[%s2687_s4 + $0x18] sm:$0xff]   ;;  %v2462_v58 = vld [vmem:[%s2686_s6 + $0x1] ss:$0 sm:$0xff] }
  0xf0   :  { %v225_v2 = vadd.f32 %v1935_v62, %v2389_v0  ;;  %v216_v3 = vpop.f32.mrb[11].mxu0  ;;  %1977 = vmatmul.mubr.bf16.gmra.mrb[20].mxu1 %v343_v52  ;;  %v334_v7 = vmax.f32 %v286_v63, 0.0  ;;  %v289_v8 = vadd.f32 %v1951_v5, %v2389_v0  ;;  %v280_v9 = vpop.f32.mrb[11].mxu1  ;;  %v318_v10 = vmax.f32 %v222_v57, 0.0  ;;  %v2169_v52 = vld [vmem:[%s2685_s3 + $0x38] sm:$0xff]   ;;  %v2176_v57 = vld [vmem:[%s2687_s4 + $0x30] sm:$0xff]  }
  0xf1   :  { %v217_v6 = vadd.f32 %v2389_v0, %v216_v3  ;;  %v332_v12 = vmax.f32 %v278_v4, 0.0  ;;  %v281_v13 = vadd.f32 %v2389_v0, %v280_v9  ;;  %v316_v14 = vmax.f32 %v214_v61, 0.0 }
  0xf2   :  { %v319_v11 = vmax.f32 %v225_v2, 0.0  ;;  %v335_v16 = vmax.f32 %v289_v8, 0.0 }
  0xf3   :  { %v317_v15 = vmax.f32 %v217_v6, 0.0  ;;  %v333_v18 = vmax.f32 %v281_v13, 0.0 }
  0xf4   :  { %v345_v17 = vpack.c.bf16 %v319_v11, %v318_v10  ;;  %v353_v21 = vpack.c.bf16 %v335_v16, %v334_v7 }
  0xf5   :  { %v344_v19 = vpack.c.bf16 %v317_v15, %v316_v14  ;;  %v1938_v20 = vpop.f32.mrb[12].mxu0  ;;  %v352_v24 = vpack.c.bf16 %v333_v18, %v332_v12  ;;  %v1954_v25 = vpop.f32.mrb[12].mxu1 }
  0xf6   :  { %v238_v22 = vadd.f32 %v1938_v20, %v2389_v0  ;;  %v229_v23 = vpop.f32.mrb[13].mxu0  ;;  %v302_v29 = vadd.f32 %v1954_v25, %v2389_v0  ;;  %v293_v30 = vpop.f32.mrb[13].mxu1 }
  0xf7   :  { %v230_v26 = vadd.f32 %v2389_v0, %v229_v23  ;;  %v1939_v27 = vpop.f32.mrb[14].mxu0  ;;  %1980 = vmatprep.mubr.bf16.mxu1 %v344_v19  ;;  %v294_v34 = vadd.f32 %v2389_v0, %v293_v30  ;;  %v1955_v35 = vpop.f32.mrb[14].mxu1 }
  0xf8   :  { %v241_v32 = vadd.f32 %v1939_v27, %v2389_v0  ;;  %v232_v33 = vpop.f32.mrb[15].mxu0  ;;  %1981 = vmatmul.mubr.bf16.gmra.mrb[24].mxu1 %v345_v17  ;;  %v338_v37 = vmax.f32 %v302_v29, 0.0  ;;  %v305_v38 = vadd.f32 %v1955_v35, %v2389_v0  ;;  %v296_v39 = vpop.f32.mrb[15].mxu1  ;;  %v322_v40 = vmax.f32 %v238_v22, 0.0 }
  0xf9   :  { %v233_v36 = vadd.f32 %v2389_v0, %v232_v33  ;;  %v336_v42 = vmax.f32 %v294_v34, 0.0  ;;  %v297_v43 = vadd.f32 %v2389_v0, %v296_v39  ;;  %v320_v44 = vmax.f32 %v230_v26, 0.0  ;;  %v2168_v0 = vld [vmem:[%s2685_s3 + $0x30] sm:$0xff]  }
  0xfa   :  { %v323_v41 = vmax.f32 %v241_v32, 0.0  ;;  %v339_v46 = vmax.f32 %v305_v38, 0.0  ;;  %2016 = vmatprep.subr.bf16.mxu0 %v2168_v0 }
  0xfb   :  { %v321_v45 = vmax.f32 %v233_v36, 0.0  ;;  %v337_v48 = vmax.f32 %v297_v43, 0.0  ;;  %2017 = vmatpush3.bf16.msra.mxu0 %v2168_v0 }
  0xfc   :  { %v347_v47 = vpack.c.bf16 %v323_v41, %v322_v40  ;;  %v355_v50 = vpack.c.bf16 %v339_v46, %v338_v37  ;;  %2018 = vmatprep.subr.bf16.mxu0 %v2169_v52 }
  0xfd   :  { %v346_v49 = vpack.c.bf16 %v321_v45, %v320_v44  ;;  %v354_v51 = vpack.c.bf16 %v337_v48, %v336_v42 }
  0xff   :  { %1984 = vmatprep.mubr.bf16.mxu1 %v346_v49  ;;  %2019 = vmatpush3.bf16.msra.mxu0 %v2169_v52 }
 0x100   :  { %1985 = vmatmul.mubr.bf16.gmra.mrb[28].mxu1 %v347_v47 }
 0x101   :  { %1988 = vmatprep.mubr.bf16.mxu1 %v2402_v31  ;;  %v2171_v31 = vld [vmem:[%s2687_s4 + $0x8] sm:$0xff]  }
 0x108   :  { %1989 = vmatmul.mubr.bf16.gmra.mrb[32].mxu1 %v2399_v28  ;;  %v2170_v28 = vld [vmem:[%s2687_s4] sm:$0xff]  }
 0x109   :  { %1992 = vmatprep.mubr.bf16.mxu1 %v350_v59  ;;  %2052 = vmatprep.subr.bf16.mxu1 %v2170_v28 }
 0x10a   :  { %2053 = vmatpush3.bf16.msra.mxu1 %v2170_v28 }
 0x10b   :  { %2054 = vmatprep.subr.bf16.mxu1 %v2171_v31 }
 0x10e   :  { %2055 = vmatpush3.bf16.msra.mxu1 %v2171_v31 }
 0x10f   :  { %2056 = vmatprep.subr.bf16.mxu1 %v2172_v53 }
 0x110   :  { %1993 = vmatmul.mubr.bf16.gmra.mrb[36].mxu1 %v2411_v56  ;;  %v2175_v56 = vld [vmem:[%s2687_s4 + $0x28] sm:$0xff]  }
 0x111   :  { %1996 = vmatprep.mubr.bf16.mxu1 %v352_v24 }
 0x112   :  { %2057 = vmatpush3.bf16.msra.mxu1 %v2172_v53 }
 0x113   :  { %2058 = vmatprep.subr.bf16.mxu1 %v2173_v54 }
 0x116   :  { %2059 = vmatpush3.bf16.msra.mxu1 %v2173_v54 }
 0x117   :  { %2060 = vmatprep.subr.bf16.mxu1 %v2174_v55 }
 0x118   :  { %1997 = vmatmul.mubr.bf16.gmra.mrb[40].mxu1 %v353_v21 }
 0x119   :  { %2000 = vmatprep.mubr.bf16.mxu1 %v354_v51 }
 0x11a   :  { %2061 = vmatpush3.bf16.msra.mxu1 %v2174_v55 }
 0x11b   :  { %2062 = vmatprep.subr.bf16.mxu1 %v2175_v56 }
 0x11e   :  { %2063 = vmatpush3.bf16.msra.mxu1 %v2175_v56 }
 0x11f   :  { %2064 = vmatprep.subr.bf16.mxu1 %v2176_v57 }
 0x120   :  { %2001 = vmatmul.mubr.bf16.gmra.mrb[44].mxu1 %v355_v50 }
 0x122   :  { %2065 = vmatpush3.bf16.msra.mxu1 %v2176_v57 }
 0x1bb   :  { %v1974_v59 = vpop.f32.mrb[16].mxu1 }
 0x1bc   :  { %v470_v60 = vadd.f32 %v1974_v59, %v2462_v58  ;;  %v461_v61 = vpop.f32.mrb[17].mxu1 }
 0x1bd   :  { %v462_v62 = vadd.f32 %v2462_v58, %v461_v61  ;;  %v1975_v63 = vpop.f32.mrb[18].mxu1 }
 0x1be   :  { %v473_v1 = vadd.f32 %v1975_v63, %v2462_v58  ;;  %v464_v2 = vpop.f32.mrb[19].mxu1  ;;  %v590_v4 = vmax.f32 %v470_v60, 0.0 }
 0x1bf   :  { %v465_v3 = vadd.f32 %v2462_v58, %v464_v2  ;;  %v588_v6 = vmax.f32 %v462_v62, 0.0 }
 0x1c0   :  { %v591_v5 = vmax.f32 %v473_v1, 0.0 }
 0x1c1   :  { %v589_v7 = vmax.f32 %v465_v3, 0.0 }
 0x1c2   :  { %v621_v8 = vpack.c.bf16 %v591_v5, %v590_v4 }
 0x1c3   :  { %v620_v9 = vpack.c.bf16 %v589_v7, %v588_v6  ;;  %v1978_v10 = vpop.f32.mrb[20].mxu1 }
 0x1c4   :  { %v486_v11 = vadd.f32 %v1978_v10, %v2462_v58  ;;  %v477_v12 = vpop.f32.mrb[21].mxu1 }
 0x1c5   :  { %v478_v13 = vadd.f32 %v2462_v58, %v477_v12  ;;  %v1979_v14 = vpop.f32.mrb[22].mxu1  ;;  %2020 = vmatprep.mubr.bf16.mxu0 %v620_v9 }
 0x1c6   :  { %v489_v15 = vadd.f32 %v1979_v14, %v2462_v58  ;;  %v480_v16 = vpop.f32.mrb[23].mxu1  ;;  %2021 = vmatmul.mubr.bf16.vlgmr.msra.gmra.mrb[16].mxu0 %v621_v8  ;;  %v594_v18 = vmax.f32 %v486_v11, 0.0 }
 0x1c7   :  { %v481_v17 = vadd.f32 %v2462_v58, %v480_v16  ;;  %v592_v20 = vmax.f32 %v478_v13, 0.0 }
 0x1c8   :  { %v595_v19 = vmax.f32 %v489_v15, 0.0 }
 0x1c9   :  { %v593_v21 = vmax.f32 %v481_v17, 0.0 }
 0x1ca   :  { %v623_v22 = vpack.c.bf16 %v595_v19, %v594_v18 }
 0x1cb   :  { %v622_v23 = vpack.c.bf16 %v593_v21, %v592_v20  ;;  %v1982_v24 = vpop.f32.mrb[24].mxu1 }
 0x1cc   :  { %v502_v25 = vadd.f32 %v1982_v24, %v2462_v58  ;;  %v493_v26 = vpop.f32.mrb[25].mxu1 }
 0x1cd   :  { %v494_v27 = vadd.f32 %v2462_v58, %v493_v26  ;;  %v1983_v29 = vpop.f32.mrb[26].mxu1  ;;  %2024 = vmatprep.mubr.bf16.mxu0 %v622_v23 }
 0x1ce   :  { %v505_v30 = vadd.f32 %v1983_v29, %v2462_v58  ;;  %v496_v32 = vpop.f32.mrb[27].mxu1  ;;  %2025 = vmatmul.mubr.bf16.gmra.mrb[20].mxu0 %v623_v22  ;;  %v598_v34 = vmax.f32 %v502_v25, 0.0 }
 0x1cf   :  { %v497_v33 = vadd.f32 %v2462_v58, %v496_v32  ;;  %v596_v36 = vmax.f32 %v494_v27, 0.0 }
 0x1d0   :  { %v599_v35 = vmax.f32 %v505_v30, 0.0 }
 0x1d1   :  { %v597_v37 = vmax.f32 %v497_v33, 0.0 }
 0x1d2   :  { %v625_v38 = vpack.c.bf16 %v599_v35, %v598_v34 }
 0x1d3   :  { %v624_v39 = vpack.c.bf16 %v597_v37, %v596_v36  ;;  %v1986_v40 = vpop.f32.mrb[28].mxu1 }
 0x1d4   :  { %v518_v41 = vadd.f32 %v1986_v40, %v2462_v58  ;;  %v509_v42 = vpop.f32.mrb[29].mxu1 }
 0x1d5   :  { %v510_v43 = vadd.f32 %v2462_v58, %v509_v42  ;;  %v1987_v44 = vpop.f32.mrb[30].mxu1  ;;  %2028 = vmatprep.mubr.bf16.mxu0 %v624_v39 }
 0x1d6   :  { %v521_v45 = vadd.f32 %v1987_v44, %v2462_v58  ;;  %v512_v46 = vpop.f32.mrb[31].mxu1  ;;  %2029 = vmatmul.mubr.bf16.gmra.mrb[24].mxu0 %v625_v38  ;;  %v602_v48 = vmax.f32 %v518_v41, 0.0 }
 0x1d7   :  { %v513_v47 = vadd.f32 %v2462_v58, %v512_v46  ;;  %v600_v50 = vmax.f32 %v510_v43, 0.0 }
 0x1d8   :  { %v603_v49 = vmax.f32 %v521_v45, 0.0 }
 0x1d9   :  { %v601_v51 = vmax.f32 %v513_v47, 0.0  ;;  %v2177_v47 = vld [vmem:[%s2687_s4 + $0x38] sm:$0xff]  }
 0x1da   :  { %v627_v0 = vpack.c.bf16 %v603_v49, %v602_v48  ;;  %2066 = vmatprep.subr.bf16.mxu1 %v2177_v47  ;;  %v2178_v48 = vld [vmem:[%s2688_s5] sm:$0xff]   ;;  %v2180_v49 = vld [vmem:[%s2688_s5 + $0x10] sm:$0xff]  }
 0x1db   :  { %v626_v52 = vpack.c.bf16 %v601_v51, %v600_v50  ;;  %v1990_v28 = vpop.f32.mrb[32].mxu1  ;;  %2067 = vmatpush3.bf16.msra.mxu1 %v2177_v47  ;;  %2100 = vmatprep.subr.bf16.mxu0 %v2178_v48  ;;  %v2181_v50 = vld [vmem:[%s2688_s5 + $0x18] sm:$0xff]   ;;  %v2182_v51 = vld [vmem:[%s2688_s5 + $0x20] sm:$0xff]  }
 0x1dc   :  { %v534_v31 = vadd.f32 %v1990_v28, %v2462_v58  ;;  %v525_v53 = vpop.f32.mrb[33].mxu1  ;;  %2101 = vmatpush3.bf16.msra.mxu0 %v2178_v48  ;;  %v2523_v28 = vld [vmem:[%s2686_s6 + $0x2] ss:$0 sm:$0xff] }
 0x1dd   :  { %v526_v54 = vadd.f32 %v2462_v58, %v525_v53  ;;  %v1991_v55 = vpop.f32.mrb[34].mxu1  ;;  %2032 = vmatprep.mubr.bf16.mxu0 %v626_v52  ;;  %v2184_v52 = vld [vmem:[%s2688_s5 + $0x30] sm:$0xff]  }
 0x1de   :  { %v537_v56 = vadd.f32 %v1991_v55, %v2462_v58  ;;  %v528_v57 = vpop.f32.mrb[35].mxu1  ;;  %2033 = vmatmul.mubr.bf16.gmra.mrb[28].mxu0 %v627_v0  ;;  %v606_v60 = vmax.f32 %v534_v31, 0.0  ;;  %v2183_v0 = vld [vmem:[%s2688_s5 + $0x28] sm:$0xff]  }
 0x1df   :  { %v529_v59 = vadd.f32 %v2462_v58, %v528_v57  ;;  %v604_v62 = vmax.f32 %v526_v54, 0.0 }
 0x1e0   :  { %v607_v61 = vmax.f32 %v537_v56, 0.0 }
 0x1e1   :  { %v605_v63 = vmax.f32 %v529_v59, 0.0 }
 0x1e2   :  { %v629_v1 = vpack.c.bf16 %v607_v61, %v606_v60 }
 0x1e3   :  { %v628_v2 = vpack.c.bf16 %v605_v63, %v604_v62  ;;  %v1994_v3 = vpop.f32.mrb[36].mxu1 }
 0x1e4   :  { %v550_v4 = vadd.f32 %v1994_v3, %v2462_v58  ;;  %v541_v5 = vpop.f32.mrb[37].mxu1 }
 0x1e5   :  { %v542_v6 = vadd.f32 %v2462_v58, %v541_v5  ;;  %v1995_v7 = vpop.f32.mrb[38].mxu1  ;;  %2036 = vmatprep.mubr.bf16.mxu0 %v628_v2 }
 0x1e6   :  { %v553_v8 = vadd.f32 %v1995_v7, %v2462_v58  ;;  %v544_v9 = vpop.f32.mrb[39].mxu1  ;;  %2037 = vmatmul.mubr.bf16.gmra.mrb[32].mxu0 %v629_v1  ;;  %v610_v11 = vmax.f32 %v550_v4, 0.0 }
 0x1e7   :  { %v545_v10 = vadd.f32 %v2462_v58, %v544_v9  ;;  %v608_v13 = vmax.f32 %v542_v6, 0.0 }
 0x1e8   :  { %v611_v12 = vmax.f32 %v553_v8, 0.0 }
 0x1e9   :  { %v609_v14 = vmax.f32 %v545_v10, 0.0 }
 0x1ea   :  { %v631_v15 = vpack.c.bf16 %v611_v12, %v610_v11 }
 0x1eb   :  { %v630_v16 = vpack.c.bf16 %v609_v14, %v608_v13  ;;  %v1998_v17 = vpop.f32.mrb[40].mxu1 }
 0x1ec   :  { %v566_v18 = vadd.f32 %v1998_v17, %v2462_v58  ;;  %v557_v19 = vpop.f32.mrb[41].mxu1 }
 0x1ed   :  { %v558_v20 = vadd.f32 %v2462_v58, %v557_v19  ;;  %v1999_v21 = vpop.f32.mrb[42].mxu1  ;;  %2040 = vmatprep.mubr.bf16.mxu0 %v630_v16 }
 0x1ee   :  { %v569_v22 = vadd.f32 %v1999_v21, %v2462_v58  ;;  %v560_v23 = vpop.f32.mrb[43].mxu1  ;;  %2041 = vmatmul.mubr.bf16.gmra.mrb[36].mxu0 %v631_v15  ;;  %v614_v25 = vmax.f32 %v566_v18, 0.0 }
 0x1ef   :  { %v561_v24 = vadd.f32 %v2462_v58, %v560_v23  ;;  %v612_v27 = vmax.f32 %v558_v20, 0.0 }
 0x1f0   :  { %v615_v26 = vmax.f32 %v569_v22, 0.0 }
 0x1f1   :  { %v613_v29 = vmax.f32 %v561_v24, 0.0 }
 0x1f2   :  { %v633_v30 = vpack.c.bf16 %v615_v26, %v614_v25 }
 0x1f3   :  { %v632_v32 = vpack.c.bf16 %v613_v29, %v612_v27  ;;  %v2002_v33 = vpop.f32.mrb[44].mxu1 }
 0x1f4   :  { %v582_v34 = vadd.f32 %v2002_v33, %v2462_v58  ;;  %v573_v35 = vpop.f32.mrb[45].mxu1 }
 0x1f5   :  { %v574_v36 = vadd.f32 %v2462_v58, %v573_v35  ;;  %v2003_v37 = vpop.f32.mrb[46].mxu1  ;;  %2044 = vmatprep.mubr.bf16.mxu0 %v632_v32 }
 0x1f6   :  { %v585_v38 = vadd.f32 %v2003_v37, %v2462_v58  ;;  %v576_v39 = vpop.f32.mrb[47].mxu1  ;;  %2045 = vmatmul.mubr.bf16.gmra.mrb[40].mxu0 %v633_v30  ;;  %v618_v41 = vmax.f32 %v582_v34, 0.0 }
 0x1f7   :  { %v577_v40 = vadd.f32 %v2462_v58, %v576_v39  ;;  %v616_v43 = vmax.f32 %v574_v36, 0.0  ;;  %v2179_v58 = vld [vmem:[%s2688_s5 + $0x8] sm:$0xff]  }
 0x1f8   :  { %v619_v42 = vmax.f32 %v585_v38, 0.0  ;;  %2102 = vmatprep.subr.bf16.mxu0 %v2179_v58 }
 0x1f9   :  { %v617_v44 = vmax.f32 %v577_v40, 0.0  ;;  %2103 = vmatpush3.bf16.msra.mxu0 %v2179_v58 }
 0x1fa   :  { %v635_v45 = vpack.c.bf16 %v619_v42, %v618_v41  ;;  %2104 = vmatprep.subr.bf16.mxu0 %v2180_v49 }
 0x1fb   :  { %v634_v46 = vpack.c.bf16 %v617_v44, %v616_v43 }
 0x1fd   :  { %2048 = vmatprep.mubr.bf16.mxu0 %v634_v46  ;;  %2105 = vmatpush3.bf16.msra.mxu0 %v2180_v49 }
 0x1fe   :  { %2049 = vmatmul.mubr.bf16.gmra.mrb[44].mxu0 %v635_v45  ;;  %2106 = vmatprep.subr.bf16.mxu0 %v2181_v50 }
 0x201   :  { %2107 = vmatpush3.bf16.msra.mxu0 %v2181_v50 }
 0x202   :  { %2108 = vmatprep.subr.bf16.mxu0 %v2182_v51 }
 0x205   :  { %2109 = vmatpush3.bf16.msra.mxu0 %v2182_v51 }
 0x206   :  { %2110 = vmatprep.subr.bf16.mxu0 %v2183_v0 }
 0x209   :  { %2111 = vmatpush3.bf16.msra.mxu0 %v2183_v0 }
 0x20a   :  { %2112 = vmatprep.subr.bf16.mxu0 %v2184_v52 }
 0x20d   :  { %2113 = vmatpush3.bf16.msra.mxu0 %v2184_v52 }
 0x299   :  { %v2022_v31 = vpop.f32.mrb[16].mxu0 }
 0x29a   :  { %v750_v53 = vadd.f32 %v2022_v31, %v2523_v28  ;;  %v741_v54 = vpop.f32.mrb[17].mxu0 }
 0x29b   :  { %v742_v55 = vadd.f32 %v2523_v28, %v741_v54  ;;  %v2023_v56 = vpop.f32.mrb[18].mxu0 }
 0x29c   :  { %v753_v57 = vadd.f32 %v2023_v56, %v2523_v28  ;;  %v744_v59 = vpop.f32.mrb[19].mxu0  ;;  %v870_v61 = vmax.f32 %v750_v53, 0.0 }
 0x29d   :  { %v745_v60 = vadd.f32 %v2523_v28, %v744_v59  ;;  %v868_v63 = vmax.f32 %v742_v55, 0.0 }
 0x29e   :  { %v871_v62 = vmax.f32 %v753_v57, 0.0 }
 0x29f   :  { %v869_v1 = vmax.f32 %v745_v60, 0.0 }
 0x2a0   :  { %v901_v2 = vpack.c.bf16 %v871_v62, %v870_v61 }
 0x2a1   :  { %v900_v3 = vpack.c.bf16 %v869_v1, %v868_v63  ;;  %v2026_v4 = vpop.f32.mrb[20].mxu0 }
 0x2a2   :  { %v766_v5 = vadd.f32 %v2026_v4, %v2523_v28  ;;  %v757_v6 = vpop.f32.mrb[21].mxu0 }
 0x2a3   :  { %v758_v7 = vadd.f32 %v2523_v28, %v757_v6  ;;  %v2027_v8 = vpop.f32.mrb[22].mxu0  ;;  %2068 = vmatprep.mubr.bf16.mxu1 %v900_v3 }
 0x2a4   :  { %v769_v9 = vadd.f32 %v2027_v8, %v2523_v28  ;;  %v760_v10 = vpop.f32.mrb[23].mxu0  ;;  %2069 = vmatmul.mubr.bf16.vlgmr.msra.gmra.mrb[48].mxu1 %v901_v2  ;;  %v874_v12 = vmax.f32 %v766_v5, 0.0 }
 0x2a5   :  { %v761_v11 = vadd.f32 %v2523_v28, %v760_v10  ;;  %v872_v14 = vmax.f32 %v758_v7, 0.0 }
 0x2a6   :  { %v875_v13 = vmax.f32 %v769_v9, 0.0 }
 0x2a7   :  { %v873_v15 = vmax.f32 %v761_v11, 0.0 }
 0x2a8   :  { %v903_v16 = vpack.c.bf16 %v875_v13, %v874_v12 }
 0x2a9   :  { %v902_v17 = vpack.c.bf16 %v873_v15, %v872_v14  ;;  %v2030_v18 = vpop.f32.mrb[24].mxu0 }
 0x2aa   :  { %v782_v19 = vadd.f32 %v2030_v18, %v2523_v28  ;;  %v773_v20 = vpop.f32.mrb[25].mxu0 }
 0x2ab   :  { %v774_v21 = vadd.f32 %v2523_v28, %v773_v20  ;;  %v2031_v22 = vpop.f32.mrb[26].mxu0  ;;  %2072 = vmatprep.mubr.bf16.mxu1 %v902_v17 }
 0x2ac   :  { %v785_v23 = vadd.f32 %v2031_v22, %v2523_v28  ;;  %v776_v24 = vpop.f32.mrb[27].mxu0  ;;  %2073 = vmatmul.mubr.bf16.gmra.mrb[52].mxu1 %v903_v16  ;;  %v878_v26 = vmax.f32 %v782_v19, 0.0 }
 0x2ad   :  { %v777_v25 = vadd.f32 %v2523_v28, %v776_v24  ;;  %v876_v29 = vmax.f32 %v774_v21, 0.0 }
 0x2ae   :  { %v879_v27 = vmax.f32 %v785_v23, 0.0 }
 0x2af   :  { %v877_v30 = vmax.f32 %v777_v25, 0.0 }
 0x2b0   :  { %v905_v32 = vpack.c.bf16 %v879_v27, %v878_v26 }
 0x2b1   :  { %v904_v33 = vpack.c.bf16 %v877_v30, %v876_v29  ;;  %v2034_v34 = vpop.f32.mrb[28].mxu0 }
 0x2b2   :  { %v798_v35 = vadd.f32 %v2034_v34, %v2523_v28  ;;  %v789_v36 = vpop.f32.mrb[29].mxu0 }
 0x2b3   :  { %v790_v37 = vadd.f32 %v2523_v28, %v789_v36  ;;  %v2035_v38 = vpop.f32.mrb[30].mxu0  ;;  %2076 = vmatprep.mubr.bf16.mxu1 %v904_v33 }
 0x2b4   :  { %v801_v39 = vadd.f32 %v2035_v38, %v2523_v28  ;;  %v792_v40 = vpop.f32.mrb[31].mxu0  ;;  %2077 = vmatmul.mubr.bf16.gmra.mrb[56].mxu1 %v905_v32  ;;  %v882_v42 = vmax.f32 %v798_v35, 0.0 }
 0x2b5   :  { %v793_v41 = vadd.f32 %v2523_v28, %v792_v40  ;;  %v880_v44 = vmax.f32 %v790_v37, 0.0 }
 0x2b6   :  { %v883_v43 = vmax.f32 %v801_v39, 0.0 }
 0x2b7   :  { %v881_v45 = vmax.f32 %v793_v41, 0.0  ;;  %v2185_v41 = vld [vmem:[%s2688_s5 + $0x38] sm:$0xff]  }
 0x2b8   :  { %v907_v46 = vpack.c.bf16 %v883_v43, %v882_v42  ;;  %2114 = vmatprep.subr.bf16.mxu0 %v2185_v41  ;;  %v2563_v42 = vld [vmem:[%s2686_s6 + $0x3] ss:$0 sm:$0xff] }
 0x2b9   :  { %v906_v47 = vpack.c.bf16 %v881_v45, %v880_v44  ;;  %v2038_v48 = vpop.f32.mrb[32].mxu0  ;;  %2115 = vmatpush3.bf16.msra.mxu0 %v2185_v41 }
 0x2ba   :  { %v814_v58 = vadd.f32 %v2038_v48, %v2523_v28  ;;  %v805_v49 = vpop.f32.mrb[33].mxu0 }
 0x2bb   :  { %v806_v50 = vadd.f32 %v2523_v28, %v805_v49  ;;  %v2039_v51 = vpop.f32.mrb[34].mxu0  ;;  %2080 = vmatprep.mubr.bf16.mxu1 %v906_v47 }
 0x2bc   :  { %v817_v0 = vadd.f32 %v2039_v51, %v2523_v28  ;;  %v808_v52 = vpop.f32.mrb[35].mxu0  ;;  %2081 = vmatmul.mubr.bf16.gmra.mrb[60].mxu1 %v907_v46  ;;  %v886_v53 = vmax.f32 %v814_v58, 0.0 }
 0x2bd   :  { %v809_v31 = vadd.f32 %v2523_v28, %v808_v52  ;;  %v884_v55 = vmax.f32 %v806_v50, 0.0 }
 0x2be   :  { %v887_v54 = vmax.f32 %v817_v0, 0.0 }
 0x2bf   :  { %v885_v56 = vmax.f32 %v809_v31, 0.0 }
 0x2c0   :  { %v909_v57 = vpack.c.bf16 %v887_v54, %v886_v53 }
 0x2c1   :  { %v908_v59 = vpack.c.bf16 %v885_v56, %v884_v55  ;;  %v2042_v60 = vpop.f32.mrb[36].mxu0 }
 0x2c2   :  { %v830_v61 = vadd.f32 %v2042_v60, %v2523_v28  ;;  %v821_v62 = vpop.f32.mrb[37].mxu0 }
 0x2c3   :  { %v822_v63 = vadd.f32 %v2523_v28, %v821_v62  ;;  %v2043_v1 = vpop.f32.mrb[38].mxu0  ;;  %2084 = vmatprep.mubr.bf16.mxu1 %v908_v59 }
 0x2c4   :  { %v833_v2 = vadd.f32 %v2043_v1, %v2523_v28  ;;  %v824_v3 = vpop.f32.mrb[39].mxu0  ;;  %2085 = vmatmul.mubr.bf16.gmra.mrb[64].mxu1 %v909_v57  ;;  %v890_v5 = vmax.f32 %v830_v61, 0.0 }
 0x2c5   :  { %v825_v4 = vadd.f32 %v2523_v28, %v824_v3  ;;  %v888_v7 = vmax.f32 %v822_v63, 0.0 }
 0x2c6   :  { %v891_v6 = vmax.f32 %v833_v2, 0.0 }
 0x2c7   :  { %v889_v8 = vmax.f32 %v825_v4, 0.0 }
 0x2c8   :  { %v911_v9 = vpack.c.bf16 %v891_v6, %v890_v5 }
 0x2c9   :  { %v910_v10 = vpack.c.bf16 %v889_v8, %v888_v7  ;;  %v2046_v11 = vpop.f32.mrb[40].mxu0 }
 0x2ca   :  { %v846_v12 = vadd.f32 %v2046_v11, %v2523_v28  ;;  %v837_v13 = vpop.f32.mrb[41].mxu0 }
 0x2cb   :  { %v838_v14 = vadd.f32 %v2523_v28, %v837_v13  ;;  %v2047_v15 = vpop.f32.mrb[42].mxu0  ;;  %2088 = vmatprep.mubr.bf16.mxu1 %v910_v10 }
 0x2cc   :  { %v849_v16 = vadd.f32 %v2047_v15, %v2523_v28  ;;  %v840_v17 = vpop.f32.mrb[43].mxu0  ;;  %2089 = vmatmul.mubr.bf16.gmra.mrb[68].mxu1 %v911_v9  ;;  %v894_v19 = vmax.f32 %v846_v12, 0.0 }
 0x2cd   :  { %v841_v18 = vadd.f32 %v2523_v28, %v840_v17  ;;  %v892_v21 = vmax.f32 %v838_v14, 0.0 }
 0x2ce   :  { %v895_v20 = vmax.f32 %v849_v16, 0.0 }
 0x2cf   :  { %v893_v22 = vmax.f32 %v841_v18, 0.0 }
 0x2d0   :  { %v913_v23 = vpack.c.bf16 %v895_v20, %v894_v19 }
 0x2d1   :  { %v912_v24 = vpack.c.bf16 %v893_v22, %v892_v21  ;;  %v2050_v25 = vpop.f32.mrb[44].mxu0 }
 0x2d2   :  { %v862_v26 = vadd.f32 %v2050_v25, %v2523_v28  ;;  %v853_v27 = vpop.f32.mrb[45].mxu0 }
 0x2d3   :  { %v854_v29 = vadd.f32 %v2523_v28, %v853_v27  ;;  %v2051_v30 = vpop.f32.mrb[46].mxu0  ;;  %2092 = vmatprep.mubr.bf16.mxu1 %v912_v24 }
 0x2d4   :  { %v865_v32 = vadd.f32 %v2051_v30, %v2523_v28  ;;  %v856_v33 = vpop.f32.mrb[47].mxu0  ;;  %2093 = vmatmul.mubr.bf16.gmra.mrb[72].mxu1 %v913_v23  ;;  %v898_v35 = vmax.f32 %v862_v26, 0.0 }
 0x2d5   :  { %v857_v34 = vadd.f32 %v2523_v28, %v856_v33  ;;  %v896_v37 = vmax.f32 %v854_v29, 0.0 }
 0x2d6   :  { %v899_v36 = vmax.f32 %v865_v32, 0.0 }
 0x2d7   :  { %v897_v38 = vmax.f32 %v857_v34, 0.0 }
 0x2d8   :  { %v915_v39 = vpack.c.bf16 %v899_v36, %v898_v35 }
 0x2d9   :  { %v914_v40 = vpack.c.bf16 %v897_v38, %v896_v37 }
 0x2db   :  { %2096 = vmatprep.mubr.bf16.mxu1 %v914_v40 }
 0x2dc   :  { %2097 = vmatmul.mubr.bf16.gmra.mrb[76].mxu1 %v915_v39 }
 0x377   :  { %v2070_v28 = vpop.f32.mrb[48].mxu1 }
 0x378   :  { %v1030_v43 = vadd.f32 %v2070_v28, %v2563_v42  ;;  %v1021_v44 = vpop.f32.mrb[49].mxu1 }
 0x379   :  { %v1022_v45 = vadd.f32 %v2563_v42, %v1021_v44  ;;  %v2071_v46 = vpop.f32.mrb[50].mxu1 }
 0x37a   :  { %v1033_v47 = vadd.f32 %v2071_v46, %v2563_v42  ;;  %v1024_v48 = vpop.f32.mrb[51].mxu1  ;;  %v1150_v49 = vmax.f32 %v1030_v43, 0.0 }
 0x37b   :  { %v1025_v58 = vadd.f32 %v2563_v42, %v1024_v48  ;;  %v1148_v51 = vmax.f32 %v1022_v45, 0.0 }
 0x37c   :  { %v1151_v50 = vmax.f32 %v1033_v47, 0.0 }
 0x37d   :  { %v1149_v0 = vmax.f32 %v1025_v58, 0.0 }
 0x37e   :  { %v1181_v52 = vpack.c.bf16 %v1151_v50, %v1150_v49 }
 0x37f   :  { %v1180_v31 = vpack.c.bf16 %v1149_v0, %v1148_v51  ;;  %v2074_v53 = vpop.f32.mrb[52].mxu1 }
 0x380   :  { %v1046_v54 = vadd.f32 %v2074_v53, %v2563_v42  ;;  %v1037_v55 = vpop.f32.mrb[53].mxu1 }
 0x381   :  { %v1038_v56 = vadd.f32 %v2563_v42, %v1037_v55  ;;  %v2075_v57 = vpop.f32.mrb[54].mxu1  ;;  %2116 = vmatprep.mubr.bf16.mxu0 %v1180_v31 }
 0x382   :  { %v1049_v59 = vadd.f32 %v2075_v57, %v2563_v42  ;;  %v1040_v60 = vpop.f32.mrb[55].mxu1  ;;  %2117 = vmatmul.mubr.bf16.vlgmr.msra.gmra.mrb[48].mxu0 %v1181_v52  ;;  %v1154_v62 = vmax.f32 %v1046_v54, 0.0 }
 0x383   :  { %v1041_v61 = vadd.f32 %v2563_v42, %v1040_v60  ;;  %v1152_v1 = vmax.f32 %v1038_v56, 0.0 }
 0x384   :  { %v1155_v63 = vmax.f32 %v1049_v59, 0.0 }
 0x385   :  { %v1153_v2 = vmax.f32 %v1041_v61, 0.0 }
 0x386   :  { %v1183_v3 = vpack.c.bf16 %v1155_v63, %v1154_v62 }
 0x387   :  { %v1182_v4 = vpack.c.bf16 %v1153_v2, %v1152_v1  ;;  %v2078_v5 = vpop.f32.mrb[56].mxu1 }
 0x388   :  { %v1062_v6 = vadd.f32 %v2078_v5, %v2563_v42  ;;  %v1053_v7 = vpop.f32.mrb[57].mxu1 }
 0x389   :  { %v1054_v8 = vadd.f32 %v2563_v42, %v1053_v7  ;;  %v2079_v9 = vpop.f32.mrb[58].mxu1  ;;  %2120 = vmatprep.mubr.bf16.mxu0 %v1182_v4 }
 0x38a   :  { %v1065_v10 = vadd.f32 %v2079_v9, %v2563_v42  ;;  %v1056_v11 = vpop.f32.mrb[59].mxu1  ;;  %2121 = vmatmul.mubr.bf16.gmra.mrb[52].mxu0 %v1183_v3  ;;  %v1158_v13 = vmax.f32 %v1062_v6, 0.0 }
 0x38b   :  { %v1057_v12 = vadd.f32 %v2563_v42, %v1056_v11  ;;  %v1156_v15 = vmax.f32 %v1054_v8, 0.0 }
 0x38c   :  { %v1159_v14 = vmax.f32 %v1065_v10, 0.0 }
 0x38d   :  { %v1157_v16 = vmax.f32 %v1057_v12, 0.0 }
 0x38e   :  { %v1185_v17 = vpack.c.bf16 %v1159_v14, %v1158_v13 }
 0x38f   :  { %v1184_v18 = vpack.c.bf16 %v1157_v16, %v1156_v15  ;;  %v2082_v19 = vpop.f32.mrb[60].mxu1 }
 0x390   :  { %v1078_v20 = vadd.f32 %v2082_v19, %v2563_v42  ;;  %v1069_v21 = vpop.f32.mrb[61].mxu1 }
 0x391   :  { %v1070_v22 = vadd.f32 %v2563_v42, %v1069_v21  ;;  %v2083_v23 = vpop.f32.mrb[62].mxu1  ;;  %2124 = vmatprep.mubr.bf16.mxu0 %v1184_v18 }
 0x392   :  { %v1081_v24 = vadd.f32 %v2083_v23, %v2563_v42  ;;  %v1072_v25 = vpop.f32.mrb[63].mxu1  ;;  %2125 = vmatmul.mubr.bf16.gmra.mrb[56].mxu0 %v1185_v17  ;;  %v1162_v27 = vmax.f32 %v1078_v20, 0.0 }
 0x393   :  { %v1073_v26 = vadd.f32 %v2563_v42, %v1072_v25  ;;  %v1160_v30 = vmax.f32 %v1070_v22, 0.0 }
 0x394   :  { %v1163_v29 = vmax.f32 %v1081_v24, 0.0 }
 0x395   :  { %v1161_v32 = vmax.f32 %v1073_v26, 0.0 }
 0x396   :  { %v1187_v33 = vpack.c.bf16 %v1163_v29, %v1162_v27  ;;  %v2600_v27 = vld [vmem:[%s2686_s6 + $0x4] ss:$0 sm:$0xff] }
 0x397   :  { %v1186_v34 = vpack.c.bf16 %v1161_v32, %v1160_v30  ;;  %v2086_v35 = vpop.f32.mrb[64].mxu1 }
 0x398   :  { %v1094_v36 = vadd.f32 %v2086_v35, %v2563_v42  ;;  %v1085_v37 = vpop.f32.mrb[65].mxu1 }
 0x399   :  { %v1086_v38 = vadd.f32 %v2563_v42, %v1085_v37  ;;  %v2087_v39 = vpop.f32.mrb[66].mxu1  ;;  %2128 = vmatprep.mubr.bf16.mxu0 %v1186_v34 }
 0x39a   :  { %v1097_v40 = vadd.f32 %v2087_v39, %v2563_v42  ;;  %v1088_v41 = vpop.f32.mrb[67].mxu1  ;;  %2129 = vmatmul.mubr.bf16.gmra.mrb[60].mxu0 %v1187_v33  ;;  %v1166_v43 = vmax.f32 %v1094_v36, 0.0 }
 0x39b   :  { %v1089_v28 = vadd.f32 %v2563_v42, %v1088_v41  ;;  %v1164_v45 = vmax.f32 %v1086_v38, 0.0 }
 0x39c   :  { %v1167_v44 = vmax.f32 %v1097_v40, 0.0 }
 0x39d   :  { %v1165_v46 = vmax.f32 %v1089_v28, 0.0 }
 0x39e   :  { %v1189_v47 = vpack.c.bf16 %v1167_v44, %v1166_v43 }
 0x39f   :  { %v1188_v48 = vpack.c.bf16 %v1165_v46, %v1164_v45  ;;  %v2090_v58 = vpop.f32.mrb[68].mxu1 }
 0x3a0   :  { %v1110_v49 = vadd.f32 %v2090_v58, %v2563_v42  ;;  %v1101_v50 = vpop.f32.mrb[69].mxu1 }
 0x3a1   :  { %v1102_v51 = vadd.f32 %v2563_v42, %v1101_v50  ;;  %v2091_v0 = vpop.f32.mrb[70].mxu1  ;;  %2132 = vmatprep.mubr.bf16.mxu0 %v1188_v48 }
 0x3a2   :  { %v1113_v52 = vadd.f32 %v2091_v0, %v2563_v42  ;;  %v1104_v31 = vpop.f32.mrb[71].mxu1  ;;  %2133 = vmatmul.mubr.bf16.gmra.mrb[64].mxu0 %v1189_v47  ;;  %v1170_v54 = vmax.f32 %v1110_v49, 0.0 }
 0x3a3   :  { %v1105_v53 = vadd.f32 %v2563_v42, %v1104_v31  ;;  %v1168_v56 = vmax.f32 %v1102_v51, 0.0 }
 0x3a4   :  { %v1171_v55 = vmax.f32 %v1113_v52, 0.0 }
 0x3a5   :  { %v1169_v57 = vmax.f32 %v1105_v53, 0.0 }
 0x3a6   :  { %v1191_v59 = vpack.c.bf16 %v1171_v55, %v1170_v54 }
 0x3a7   :  { %v1190_v60 = vpack.c.bf16 %v1169_v57, %v1168_v56  ;;  %v2094_v61 = vpop.f32.mrb[72].mxu1 }
 0x3a8   :  { %v1126_v62 = vadd.f32 %v2094_v61, %v2563_v42  ;;  %v1117_v63 = vpop.f32.mrb[73].mxu1 }
 0x3a9   :  { %v1118_v1 = vadd.f32 %v2563_v42, %v1117_v63  ;;  %v2095_v2 = vpop.f32.mrb[74].mxu1  ;;  %2136 = vmatprep.mubr.bf16.mxu0 %v1190_v60 }
 0x3aa   :  { %v1129_v3 = vadd.f32 %v2095_v2, %v2563_v42  ;;  %v1120_v4 = vpop.f32.mrb[75].mxu1  ;;  %2137 = vmatmul.mubr.bf16.gmra.mrb[68].mxu0 %v1191_v59  ;;  %v1174_v6 = vmax.f32 %v1126_v62, 0.0 }
 0x3ab   :  { %v1121_v5 = vadd.f32 %v2563_v42, %v1120_v4  ;;  %v1172_v8 = vmax.f32 %v1118_v1, 0.0 }
 0x3ac   :  { %v1175_v7 = vmax.f32 %v1129_v3, 0.0 }
 0x3ad   :  { %v1173_v9 = vmax.f32 %v1121_v5, 0.0 }
 0x3ae   :  { %v1193_v10 = vpack.c.bf16 %v1175_v7, %v1174_v6 }
 0x3af   :  { %v1192_v11 = vpack.c.bf16 %v1173_v9, %v1172_v8  ;;  %v2098_v12 = vpop.f32.mrb[76].mxu1 }
 0x3b0   :  { %v1142_v13 = vadd.f32 %v2098_v12, %v2563_v42  ;;  %v1133_v14 = vpop.f32.mrb[77].mxu1 }
 0x3b1   :  { %v1134_v15 = vadd.f32 %v2563_v42, %v1133_v14  ;;  %v2099_v16 = vpop.f32.mrb[78].mxu1  ;;  %2140 = vmatprep.mubr.bf16.mxu0 %v1192_v11 }
 0x3b2   :  { %v1145_v17 = vadd.f32 %v2099_v16, %v2563_v42  ;;  %v1136_v18 = vpop.f32.mrb[79].mxu1  ;;  %2141 = vmatmul.mubr.bf16.gmra.mrb[72].mxu0 %v1193_v10  ;;  %v1178_v20 = vmax.f32 %v1142_v13, 0.0 }
 0x3b3   :  { %v1137_v19 = vadd.f32 %v2563_v42, %v1136_v18  ;;  %v1176_v22 = vmax.f32 %v1134_v15, 0.0 }
 0x3b4   :  { %v1179_v21 = vmax.f32 %v1145_v17, 0.0 }
 0x3b5   :  { %v1177_v23 = vmax.f32 %v1137_v19, 0.0 }
 0x3b6   :  { %v1195_v24 = vpack.c.bf16 %v1179_v21, %v1178_v20 }
 0x3b7   :  { %v1194_v25 = vpack.c.bf16 %v1177_v23, %v1176_v22 }
 0x3b9   :  { %2144 = vmatprep.mubr.bf16.mxu0 %v1194_v25 }
 0x3ba   :  { %2145 = vmatmul.mubr.bf16.gmra.mrb[76].mxu0 %v1195_v24 }
 0x455   :  { %v2118_v26 = vpop.f32.mrb[48].mxu0 }
 0x456   :  { %v1301_v29 = vpop.f32.mrb[49].mxu0  ;;  %v1310_v32 = vadd.f32 %v2118_v26, %v2600_v27 }
 0x457   :  { %v2119_v30 = vpop.f32.mrb[50].mxu0  ;;  %v1302_v34 = vadd.f32 %v2600_v27, %v1301_v29 }
 0x458   :  { %v1313_v42 = vadd.f32 %v2119_v30, %v2600_v27  ;;  %v1304_v33 = vpop.f32.mrb[51].mxu0 }
 0x459   :  { %v1305_v35 = vadd.f32 %v2600_v27, %v1304_v33 }
 0x45a   :  { %v1719_v36 = vpack.c.bf16 %v1313_v42, %v1310_v32 }
 0x45b   :  { %v1714_v37 = vpack.c.bf16 %v1305_v35, %v1302_v34 }
 0x45c   :  { %1791 = vst [vmem:[%s2689_s7 + $0x8] sm:$0xff] %v1719_v36  }
 0x45d   :  { %1715 = vst [vmem:[%s2689_s7] sm:$0xff] %v1714_v37   ;;  %v2122_v38 = vpop.f32.mrb[52].mxu0 }
 0x45e   :  { %v1317_v39 = vpop.f32.mrb[53].mxu0  ;;  %v1326_v41 = vadd.f32 %v2122_v38, %v2600_v27 }
 0x45f   :  { %v2123_v40 = vpop.f32.mrb[54].mxu0  ;;  %v1318_v44 = vadd.f32 %v2600_v27, %v1317_v39 }
 0x460   :  { %v1329_v28 = vadd.f32 %v2123_v40, %v2600_v27  ;;  %v1320_v43 = vpop.f32.mrb[55].mxu0 }
 0x461   :  { %v1321_v45 = vadd.f32 %v2600_v27, %v1320_v43 }
 0x462   :  { %v1729_v46 = vpack.c.bf16 %v1329_v28, %v1326_v41 }
 0x463   :  { %v1724_v47 = vpack.c.bf16 %v1321_v45, %v1318_v44 }
 0x464   :  { %1793 = vst [vmem:[%s2689_s7 + $0x18] sm:$0xff] %v1729_v46  }
 0x465   :  { %1792 = vst [vmem:[%s2689_s7 + $0x10] sm:$0xff] %v1724_v47   ;;  %v2126_v48 = vpop.f32.mrb[56].mxu0 }
 0x466   :  { %v1333_v58 = vpop.f32.mrb[57].mxu0  ;;  %v1342_v50 = vadd.f32 %v2126_v48, %v2600_v27 }
 0x467   :  { %v2127_v49 = vpop.f32.mrb[58].mxu0  ;;  %v1334_v52 = vadd.f32 %v2600_v27, %v1333_v58 }
 0x468   :  { %v1345_v51 = vadd.f32 %v2127_v49, %v2600_v27  ;;  %v1336_v0 = vpop.f32.mrb[59].mxu0 }
 0x469   :  { %v1337_v31 = vadd.f32 %v2600_v27, %v1336_v0 }
 0x46a   :  { %v1739_v53 = vpack.c.bf16 %v1345_v51, %v1342_v50 }
 0x46b   :  { %v1734_v54 = vpack.c.bf16 %v1337_v31, %v1334_v52 }
 0x46c   :  { %1795 = vst [vmem:[%s2689_s7 + $0x28] sm:$0xff] %v1739_v53  }
 0x46d   :  { %1794 = vst [vmem:[%s2689_s7 + $0x20] sm:$0xff] %v1734_v54   ;;  %v2130_v55 = vpop.f32.mrb[60].mxu0 }
 0x46e   :  { %v1349_v56 = vpop.f32.mrb[61].mxu0  ;;  %v1358_v59 = vadd.f32 %v2130_v55, %v2600_v27 }
 0x46f   :  { %v2131_v57 = vpop.f32.mrb[62].mxu0  ;;  %v1350_v62 = vadd.f32 %v2600_v27, %v1349_v56 }
 0x470   :  { %v1361_v60 = vadd.f32 %v2131_v57, %v2600_v27  ;;  %v1352_v61 = vpop.f32.mrb[63].mxu0 }
 0x471   :  { %v1353_v63 = vadd.f32 %v2600_v27, %v1352_v61 }
 0x472   :  { %v1749_v1 = vpack.c.bf16 %v1361_v60, %v1358_v59 }
 0x473   :  { %v1744_v2 = vpack.c.bf16 %v1353_v63, %v1350_v62 }
 0x474   :  { %1797 = vst [vmem:[%s2689_s7 + $0x38] sm:$0xff] %v1749_v1  }
 0x475   :  { %1796 = vst [vmem:[%s2689_s7 + $0x30] sm:$0xff] %v1744_v2   ;;  %v2134_v3 = vpop.f32.mrb[64].mxu0 }
 0x476   :  { %v1365_v4 = vpop.f32.mrb[65].mxu0  ;;  %v1374_v6 = vadd.f32 %v2134_v3, %v2600_v27 }
 0x477   :  { %v2135_v5 = vpop.f32.mrb[66].mxu0  ;;  %v1366_v9 = vadd.f32 %v2600_v27, %v1365_v4 }
 0x478   :  { %v1377_v7 = vadd.f32 %v2135_v5, %v2600_v27  ;;  %v1368_v8 = vpop.f32.mrb[67].mxu0 }
 0x479   :  { %v1369_v10 = vadd.f32 %v2600_v27, %v1368_v8 }
 0x47a   :  { %v1759_v11 = vpack.c.bf16 %v1377_v7, %v1374_v6 }
 0x47b   :  { %v1754_v12 = vpack.c.bf16 %v1369_v10, %v1366_v9 }
 0x47c   :  { %1799 = vst [vmem:[%s2689_s7 + $0x48] sm:$0xff] %v1759_v11  }
 0x47d   :  { %1798 = vst [vmem:[%s2689_s7 + $0x40] sm:$0xff] %v1754_v12   ;;  %v2138_v13 = vpop.f32.mrb[68].mxu0 }
 0x47e   :  { %v1381_v14 = vpop.f32.mrb[69].mxu0  ;;  %v1390_v16 = vadd.f32 %v2138_v13, %v2600_v27 }
 0x47f   :  { %v2139_v15 = vpop.f32.mrb[70].mxu0  ;;  %v1382_v19 = vadd.f32 %v2600_v27, %v1381_v14 }
 0x480   :  { %v1393_v17 = vadd.f32 %v2139_v15, %v2600_v27  ;;  %v1384_v18 = vpop.f32.mrb[71].mxu0 }
 0x481   :  { %v1385_v20 = vadd.f32 %v2600_v27, %v1384_v18 }
 0x482   :  { %v1769_v21 = vpack.c.bf16 %v1393_v17, %v1390_v16 }
 0x483   :  { %v1764_v22 = vpack.c.bf16 %v1385_v20, %v1382_v19 }
 0x484   :  { %1801 = vst [vmem:[%s2689_s7 + $0x58] sm:$0xff] %v1769_v21  }
 0x485   :  { %1800 = vst [vmem:[%s2689_s7 + $0x50] sm:$0xff] %v1764_v22   ;;  %v2142_v23 = vpop.f32.mrb[72].mxu0 }
 0x486   :  { %v1397_v24 = vpop.f32.mrb[73].mxu0  ;;  %v1406_v26 = vadd.f32 %v2142_v23, %v2600_v27 }
 0x487   :  { %v2143_v25 = vpop.f32.mrb[74].mxu0  ;;  %v1398_v32 = vadd.f32 %v2600_v27, %v1397_v24 }
 0x488   :  { %v1409_v29 = vadd.f32 %v2143_v25, %v2600_v27  ;;  %v1400_v30 = vpop.f32.mrb[75].mxu0 }
 0x489   :  { %v1401_v42 = vadd.f32 %v2600_v27, %v1400_v30 }
 0x48a   :  { %v1779_v33 = vpack.c.bf16 %v1409_v29, %v1406_v26 }
 0x48b   :  { %v1774_v34 = vpack.c.bf16 %v1401_v42, %v1398_v32 }
 0x48c   :  { %1803 = vst [vmem:[%s2689_s7 + $0x68] sm:$0xff] %v1779_v33  }
 0x48d   :  { %1802 = vst [vmem:[%s2689_s7 + $0x60] sm:$0xff] %v1774_v34   ;;  %v2146_v35 = vpop.f32.mrb[76].mxu0 }
 0x48e   :  { %v1413_v36 = vpop.f32.mrb[77].mxu0  ;;  %v1422_v38 = vadd.f32 %v2146_v35, %v2600_v27 }
 0x48f   :  { %v2147_v37 = vpop.f32.mrb[78].mxu0  ;;  %v1414_v41 = vadd.f32 %v2600_v27, %v1413_v36 }
 0x490   :  { %v1425_v39 = vadd.f32 %v2147_v37, %v2600_v27  ;;  %v1416_v40 = vpop.f32.mrb[79].mxu0 }
 0x491   :  { %v1417_v28 = vadd.f32 %v2600_v27, %v1416_v40 }
 0x492   :  { %v1789_v43 = vpack.c.bf16 %v1425_v39, %v1422_v38 }
 0x493   :  { %v1784_v44 = vpack.c.bf16 %v1417_v28, %v1414_v41 }
 0x494   :  { %1805 = vst [vmem:[%s2689_s7 + $0x78] sm:$0xff] %v1789_v43  }
 0x495   :  { %1804 = vst [vmem:[%s2689_s7 + $0x70] sm:$0xff] %v1784_v44  }

</bundles_post_ra>
